<compile_context>
chip_gen: v7x
topology: tpu7x:2x2x1
jax: 0.10.0
libtpu: 0.0.40
codegen_flags: <defaults>
</compile_context>

<pallas_src>
import functools

import jax
import jax.numpy as jnp
import numpy as np
from jax.experimental import pallas as pl
from jax.experimental.pallas import tpu as pltpu


def _policy_kernel(x_ref, wc_ref, cb_ref, wfc_ref, fcb_ref, out_ref):
    # x_ref   : (TB, S*S)         f32  batch tile, lane index = h*S + w
    # wc_ref  : (S*S, 4*S*S)      f32  conv-as-matmul weight (zero padding and
    #                                  pool-friendly output order folded in)
    # cb_ref  : (1, 4*S*S)        f32  conv bias broadcast to that order
    # wfc_ref : (4*(S//2)**2, A)  f32  fc weight (PyTorch flatten order)
    # fcb_ref : (1, A)            f32  fc bias
    # out_ref : (TB, A)           f32  log-probabilities

    # --- Conv2d(1->4, 3x3, pad=1): ONE MXU matmul ---------------------------
    conv = jnp.dot(x_ref[...], wc_ref[...],
                   preferred_element_type=jnp.float32) + cb_ref[...]

    # --- Sigmoid: exp + exact reciprocal, both on the EUP slot --------------
    act = pl.reciprocal(1.0 + jnp.exp(-conv), approx=False)

    # --- MaxPool2d(2,2): conv output lanes are grouped into four vreg-aligned
    #     quarters, one per intra-window position (rh, rw); pooling is an
    #     elementwise max of the four static lane slices (pure VPU) ----------
    n = wfc_ref.shape[0]                       # 4 * (S//2)**2 lanes per slab
    pooled = jnp.maximum(
        jnp.maximum(act[:, 0 * n:1 * n], act[:, 1 * n:2 * n]),
        jnp.maximum(act[:, 2 * n:3 * n], act[:, 3 * n:4 * n]))

    # --- Linear (one matmul) + max-stabilized LogSoftmax --------------------
    logits = jnp.dot(pooled, wfc_ref[...],
                     preferred_element_type=jnp.float32) + fcb_ref[...]
    m = jnp.max(logits, axis=-1, keepdims=True)
    s = logits - m
    lse = jnp.log(jnp.sum(jnp.exp(s), axis=-1, keepdims=True))
    out_ref[...] = s - lse


@functools.lru_cache(maxsize=None)
def _conv_indicator(S):
    """(9, S*S, S*S) 0/1 tensor.  T[k, p_in, o] = 1 iff input pixel p_in is the
    k-th tap (k = (dh+1)*3 + dw+1) of the conv output written to lane
    o = (rh*2 + rw)*(S//2)**2 + ph*(S//2) + pw for output pixel
    (h, w) = (2*ph + rh, 2*pw + rw).  Missing taps = the zero padding."""
    Hp = S // 2
    Pp = Hp * Hp
    T = np.zeros((9, S * S, S * S), np.float32)
    for ph in range(Hp):
        for pw in range(Hp):
            for rh in range(2):
                for rw in range(2):
                    h, w = 2 * ph + rh, 2 * pw + rw
                    o = (rh * 2 + rw) * Pp + ph * Hp + pw
                    for dh in (-1, 0, 1):
                        for dw in (-1, 0, 1):
                            hh, ww = h + dh, w + dw
                            if 0 <= hh < S and 0 <= ww < S:
                                k = (dh + 1) * 3 + (dw + 1)
                                T[k, hh * S + ww, o] = 1.0
    return jnp.asarray(T)


def prepare_policy_params(conv_w, conv_b, fc_w, fc_b, state_dim):
    """One-time parameter re-layout.  Call once and reuse across forwards."""
    S = state_dim
    assert S % 2 == 0
    P = S * S
    Hp = S // 2
    Pp = Hp * Hp
    A = fc_w.shape[0]
    assert conv_w.shape == (4, 1, 3, 3)
    assert conv_b.shape == (4,)
    assert fc_w.shape == (A, 4 * Pp)

    T = _conv_indicator(S)                                     # (9, P, P)
    w9 = conv_w.reshape(4, 9).astype(jnp.float32)
    # Conv output lane q = ((rh*2 + rw)*4 + c) * Pp + ph*Hp + pw.
    wc = jnp.einsum('ck,kio->cio', w9, T)                      # (4, P, P)
    wc = wc.reshape(4, P, 4, Pp)                               # (c, p_in, sblk, pp)
    wc = jnp.transpose(wc, (1, 2, 0, 3)).reshape(P, 4 * P)     # (p_in, q)

    cb = jnp.tile(jnp.repeat(conv_b.astype(jnp.float32), Pp), 4).reshape(1, 4 * P)
    # Pooled lanes land in PyTorch flatten order c*Pp + ph*Hp + pw already.
    wfc = jnp.transpose(fc_w).astype(jnp.float32)              # (4*Pp, A)
    fcb = fc_b.reshape(1, A).astype(jnp.float32)
    return wc, cb, wfc, fcb


def _choose_batch_tile(B):
    if B <= 8:
        return B                       # one small block == full batch dim
    # >= 2 grid steps when possible (feeds both v7x TensorCores), multiple of
    # 8 sublanes, capped at 256 rows (comfortable MXU / VMEM block).
    tb = ((B + 1) // 2 + 7) // 8 * 8
    return min(256, tb)


def policy_net_forward(x, params):
    """x: (B, 1, S, S) NCHW.  Returns (B, action_dim) log-probabilities."""
    wc, cb, wfc, fcb = params
    P = wc.shape[0]
    S = int(round(P ** 0.5))
    A = fcb.shape[1]
    B = x.shape[0]
    assert x.shape[1:] == (1, S, S)

    if x.dtype != jnp.float32:
        x = x.astype(jnp.float32)
    x2 = x.reshape(B, P)               # free reshape, lane-dense h*S + w

    TB = _choose_batch_tile(B)
    Bp = ((B + TB - 1) // TB) * TB
    if Bp != B:
        x2 = jnp.pad(x2, ((0, Bp - B), (0, 0)))

    out = pl.pallas_call(
        _policy_kernel,
        out_shape=jax.ShapeDtypeStruct((Bp, A), jnp.float32),
        grid=(Bp // TB,),
        in_specs=[
            pl.BlockSpec((TB, P), lambda i: (i, 0)),
            pl.BlockSpec((P, 4 * P), lambda i: (0, 0)),       # VMEM-resident
            pl.BlockSpec((1, 4 * P), lambda i: (0, 0)),
            pl.BlockSpec((wfc.shape[0], A), lambda i: (0, 0)),
            pl.BlockSpec((1, A), lambda i: (0, 0)),
        ],
        out_specs=pl.BlockSpec((TB, A), lambda i: (i, 0)),
        compiler_params=pltpu.CompilerParams(
            dimension_semantics=("parallel",)),
    )(x2, wc, cb, wfc, fcb)
    return out if Bp == B else out[:B]


def reference_forward(x, conv_w, conv_b, fc_w, fc_b):
    """Pure-JAX reference matching the PyTorch module semantics."""
    out = jax.lax.conv_general_dilated(
        x, conv_w, window_strides=(1, 1), padding=((1, 1), (1, 1)),
        dimension_numbers=("NCHW", "OIHW", "NCHW"))
    out = out + conv_b.reshape(1, -1, 1, 1)
    out = jax.nn.sigmoid(out)
    B, C, H, W = out.shape
    out = out.reshape(B, C, H // 2, 2, W // 2, 2).max(axis=(3, 5))
    out = out.reshape(B, -1)
    logits = out @ fc_w.T + fc_b
    return jax.nn.log_softmax(logits, axis=-1)


if __name__ == "__main__":
    # Small shapes consistent with the module: state_dim=16 -> dimension=8.
    S, dimension, action_dim = 16, 8, 4

    key = jax.random.PRNGKey(0)
    k1, k2, k3, k4, kx = jax.random.split(key, 5)
    conv_w = jax.random.normal(k1, (4, 1, 3, 3), jnp.float32) * 0.3
    conv_b = jax.random.normal(k2, (4,), jnp.float32) * 0.1
    fc_w = jax.random.normal(k3, (action_dim, 4 * dimension * dimension),
                             jnp.float32) * 0.05
    fc_b = jax.random.normal(k4, (action_dim,), jnp.float32) * 0.1

    # One-time re-layout, reused across every forward call.
    params = prepare_policy_params(conv_w, conv_b, fc_w, fc_b, S)

    # Exercise single-block (B=2), padded (B=20) and multi-step (B=64) grids.
    for B in (2, 20, 64):
        xb = jax.random.normal(jax.random.fold_in(kx, B), (B, 1, S, S),
                               jnp.float32)
        out = jax.block_until_ready(policy_net_forward(xb, params))
        ref = jax.block_until_ready(
            reference_forward(xb, conv_w, conv_b, fc_w, fc_b))
        np.testing.assert_allclose(np.asarray(out), np.asarray(ref),
                                   rtol=1e-3, atol=1e-3)

    print("KERNEL_OK")
</pallas_src>

<mosaic_0001>
module attributes {stable_mosaic.version = 11 : i64} {
  func.func @_policy_kernel(%arg0: i32, %arg1: memref<2x256xf32, #tpu.memory_space<vmem>>, %arg2: memref<256x1024xf32, #tpu.memory_space<vmem>>, %arg3: memref<1x1024xf32, #tpu.memory_space<vmem>>, %arg4: memref<256x4xf32, #tpu.memory_space<vmem>>, %arg5: memref<1x4xf32, #tpu.memory_space<vmem>>, %arg6: memref<2x4xf32, #tpu.memory_space<vmem>>) attributes {dimension_semantics = [#tpu.dimension_semantics<parallel>], iteration_bounds = array<i64: 1>, scalar_prefetch = 0 : i64, scratch_operands = 0 : i64, tpu.core_type = #tpu.core_type<tc>, window_params = [{transform_indices = @transform_0, window_bounds = array<i64: 2, 256>}, {pipeline_mode = #tpu.pipeline_mode<synchronous>, transform_indices = @transform_1, window_bounds = array<i64: 256, 1024>}, {pipeline_mode = #tpu.pipeline_mode<synchronous>, transform_indices = @transform_2, window_bounds = array<i64: 1, 1024>}, {pipeline_mode = #tpu.pipeline_mode<synchronous>, transform_indices = @transform_3, window_bounds = array<i64: 256, 4>}, {pipeline_mode = #tpu.pipeline_mode<synchronous>, transform_indices = @transform_4, window_bounds = array<i64: 1, 4>}, {transform_indices = @transform_5, window_bounds = array<i64: 2, 4>}]} {
    %c0 = arith.constant 0 : index
    %c0_0 = arith.constant 0 : index
    %0 = vector.load %arg1[%c0, %c0_0] : memref<2x256xf32, #tpu.memory_space<vmem>>, vector<2x256xf32>
    %c0_1 = arith.constant 0 : index
    %c0_2 = arith.constant 0 : index
    %1 = vector.load %arg2[%c0_1, %c0_2] : memref<256x1024xf32, #tpu.memory_space<vmem>>, vector<256x1024xf32>
    %cst = arith.constant dense<0.000000e+00> : vector<2x1024xf32>
    %2 = tpu.matmul %0, %1, %cst {dimension_numbers = #tpu.dot_dimension_numbers<[1], [0], [0], [1], [0, 0, 1, 1], [], []>} : vector<2x256xf32>, vector<256x1024xf32>, vector<2x1024xf32> -> vector<2x1024xf32>
    %c0_3 = arith.constant 0 : index
    %c0_4 = arith.constant 0 : index
    %3 = vector.load %arg3[%c0_3, %c0_4] : memref<1x1024xf32, #tpu.memory_space<vmem>>, vector<1x1024xf32>
    %4 = vector.broadcast %3 : vector<1x1024xf32> to vector<2x1024xf32>
    %5 = arith.addf %2, %4 : vector<2x1024xf32>
    %cst_5 = arith.constant 0.000000e+00 : f32
    %6 = vector.broadcast %cst_5 : f32 to vector<2x1024xf32>
    %7 = arith.subf %6, %5 : vector<2x1024xf32>
    %8 = math.exp %7 : vector<2x1024xf32>
    %cst_6 = arith.constant 1.000000e+00 : f32
    %9 = vector.broadcast %cst_6 : f32 to vector<2x1024xf32>
    %10 = arith.addf %9, %8 : vector<2x1024xf32>
    %11 = tpu.reciprocal %10 : vector<2x1024xf32> -> vector<2x1024xf32>
    %12 = vector.extract_strided_slice %11 {offsets = [0, 0], sizes = [2, 256], strides = [1, 1]} : vector<2x1024xf32> to vector<2x256xf32>
    %13 = vector.extract_strided_slice %11 {offsets = [0, 256], sizes = [2, 256], strides = [1, 1]} : vector<2x1024xf32> to vector<2x256xf32>
    %14 = arith.maximumf %12, %13 : vector<2x256xf32>
    %15 = vector.extract_strided_slice %11 {offsets = [0, 512], sizes = [2, 256], strides = [1, 1]} : vector<2x1024xf32> to vector<2x256xf32>
    %16 = vector.extract_strided_slice %11 {offsets = [0, 768], sizes = [2, 256], strides = [1, 1]} : vector<2x1024xf32> to vector<2x256xf32>
    %17 = arith.maximumf %15, %16 : vector<2x256xf32>
    %18 = arith.maximumf %14, %17 : vector<2x256xf32>
    %c0_7 = arith.constant 0 : index
    %c0_8 = arith.constant 0 : index
    %19 = vector.load %arg4[%c0_7, %c0_8] : memref<256x4xf32, #tpu.memory_space<vmem>>, vector<256x4xf32>
    %cst_9 = arith.constant dense<0.000000e+00> : vector<2x4xf32>
    %20 = tpu.matmul %18, %19, %cst_9 {dimension_numbers = #tpu.dot_dimension_numbers<[1], [0], [0], [1], [0, 0, 1, 1], [], []>} : vector<2x256xf32>, vector<256x4xf32>, vector<2x4xf32> -> vector<2x4xf32>
    %c0_10 = arith.constant 0 : index
    %c0_11 = arith.constant 0 : index
    %21 = vector.load %arg5[%c0_10, %c0_11] : memref<1x4xf32, #tpu.memory_space<vmem>>, vector<1x4xf32>
    %22 = vector.broadcast %21 : vector<1x4xf32> to vector<2x4xf32>
    %23 = arith.addf %20, %22 : vector<2x4xf32>
    %cst_12 = arith.constant dense<0xFF800000> : vector<2xf32>
    %24 = vector.multi_reduction <maximumf>, %23, %cst_12 [1] : vector<2x4xf32> to vector<2xf32>
    %25 = vector.shape_cast %24 : vector<2xf32> to vector<2x1xf32>
    %26 = vector.broadcast %25 : vector<2x1xf32> to vector<2x4xf32>
    %27 = arith.subf %23, %26 : vector<2x4xf32>
    %28 = math.exp %27 : vector<2x4xf32>
    %cst_13 = arith.constant dense<0.000000e+00> : vector<2xf32>
    %29 = vector.multi_reduction <add>, %28, %cst_13 [1] : vector<2x4xf32> to vector<2xf32>
    %30 = vector.shape_cast %29 : vector<2xf32> to vector<2x1xf32>
    %31 = math.log %30 : vector<2x1xf32>
    %32 = vector.broadcast %31 : vector<2x1xf32> to vector<2x4xf32>
    %33 = arith.subf %27, %32 : vector<2x4xf32>
    %c0_14 = arith.constant 0 : index
    %c0_15 = arith.constant 0 : index
    %34 = vector.load %arg6[%c0_14, %c0_15] : memref<2x4xf32, #tpu.memory_space<vmem>>, vector<2x4xf32>
    tpu.vector_store %arg6[%c0_14, %c0_15], %33 {strides = array<i32>} : memref<2x4xf32, #tpu.memory_space<vmem>>, vector<2x4xf32>,
    return
  }
  func.func @transform_0(%arg0: i32) -> (i32, i32) {
    %c0_i32 = arith.constant 0 : i32
    %c0_i32_0 = arith.constant 0 : i32
    return %arg0, %c0_i32 : i32, i32
  }
  func.func @transform_1(%arg0: i32) -> (i32, i32) {
    %c0_i32 = arith.constant 0 : i32
    %c0_i32_0 = arith.constant 0 : i32
    %c0_i32_1 = arith.constant 0 : i32
    return %c0_i32, %c0_i32_0 : i32, i32
  }
  func.func @transform_2(%arg0: i32) -> (i32, i32) {
    %c0_i32 = arith.constant 0 : i32
    %c0_i32_0 = arith.constant 0 : i32
    %c0_i32_1 = arith.constant 0 : i32
    return %c0_i32, %c0_i32_0 : i32, i32
  }
  func.func @transform_3(%arg0: i32) -> (i32, i32) {
    %c0_i32 = arith.constant 0 : i32
    %c0_i32_0 = arith.constant 0 : i32
    %c0_i32_1 = arith.constant 0 : i32
    return %c0_i32, %c0_i32_0 : i32, i32
  }
  func.func @transform_4(%arg0: i32) -> (i32, i32) {
    %c0_i32 = arith.constant 0 : i32
    %c0_i32_0 = arith.constant 0 : i32
    %c0_i32_1 = arith.constant 0 : i32
    return %c0_i32, %c0_i32_0 : i32, i32
  }
  func.func @transform_5(%arg0: i32) -> (i32, i32) {
    %c0_i32 = arith.constant 0 : i32
    %c0_i32_0 = arith.constant 0 : i32
    return %arg0, %c0_i32 : i32, i32
  }
}

</mosaic_0001>

<bundles_post_ra>
// kernel: tpu_custom_call.1
= control target key start
LH: loop header
LB: loop body
LE: loop exit
PB: predicated region body
PF: predicated region fallthrough
CT: control target
= control target key end

     0   :  { %10 = vsyncpa [#allocation3], 0  ;;  %s1406_s0 = inlined_call_operand.vmem [shape: f32[2,256], index: 0, kind: input, shape index: {}]   ;;  %s1407_s1 = inlined_call_operand.hbm [shape: f32[256,1024], index: 1, kind: input, shape index: {}]   ;;  %s1408_s2 = inlined_call_operand.vmem [shape: f32[1,1024], index: 2, kind: input, shape index: {}]   ;;  %s1409_s3 = inlined_call_operand.vmem [shape: f32[256,4], index: 3, kind: input, shape index: {}]   ;;  %s1410_s4 = inlined_call_operand.vmem [shape: f32[1,4], index: 4, kind: input, shape index: {}]   ;;  %s1411_s5 = inlined_call_operand.hbm [shape: f32[2,4], index: 5, kind: output, shape index: {}]  }
   0x1   :  { %11 = vsyncpa [#allocation4], 0  ;;  %s1226_s18 = smov [#allocation2]   ;;  %s1178_s22 = scalar_lea.hbm %s1407_s1, 32768 }
   0x2   :  { %s19_s19 = sshll.u32 %s1226_s18, 4  ;;  %p1179_p0 = scmp.ne.s32.totalorder %s1407_s1, %s1178_s22  ;;  %s20_s19 = int_to_ptr.vmem [resolvable:$true] %s19_s19 }
   0x3   :  { %p1182_p1 = scmp.lt.u32.totalorder %s1178_s22, %s1407_s1 }
   0x5   :  { %p1184_p2 = pnand %p1182_p1, %p1179_p0 }
   0x7   :  { %1187 = shalt.err (!%p1184_p2)
}
   0x8   :  { %s1188_s27 = scalar_lea.vmem %s20_s19, 32768  ;;  %p1193_p4 = scmp.lt.s32.totalorder %s20_s19, %s20_s19 }
   0x9   :  { %p1189_p3 = scmp.ne.s32.totalorder %s20_s19, %s1188_s27  ;;  %p1194_p5 = scmp.lt.s32.totalorder %s1188_s27, %s1188_s27 }
   0xb   :  { %p1195_p6 = por %p1194_p5, %p1193_p4 }
   0xd   :  { %p1196_p7 = pnand %p1195_p6, %p1189_p3 }
   0xf   :  { %1199 = shalt.err (!%p1196_p7)
}
  0x10   :  { %s1227_s28 = smov 1024   ;;  %s1228_s29 = smov 64  }
  0x11   :  { %25 = dma.hbm_to_vmem [thread:$0]  %s1407_s1, 32768, %s20_s19, [#allocation3], %s1227_s28, %s1227_s28, %s1228_s29  }
  0x12   :  { %1222 = dma.done.wait [#allocation3], 32768  }
  0x13   :  { %1223 = vsyncadd [#allocation3], 4294934528  ;;  %v37_v0 = vld [vmem:[#allocation2 + $0x8] sm:$0xff]  ;;  %v39_v2 = vld [vmem:[#allocation2 + $0x18] sm:$0xff]  ;;  %vm784_vm0 = vcmask 25600   ;;  %s1229_s19 = smov [#allocation5]  }
  0x14   :  { %v45_v1 = vld [vmem:[#allocation2 + $0x48] sm:$0xff]  ;;  %v47_v4 = vld [vmem:[#allocation2 + $0x58] sm:$0xff]  ;;  %v36_v5 = vld [vmem:[#allocation2] sm:$0xff]  ;;  %s804_s20 = sshll.u32 %s1229_s19, 4  ;;  %s805_s20 = int_to_ptr.vmem [resolvable:$true] %s804_s20 }
  0x15   :  { %v850_v3 = vpack.c.bf16 %v45_v1, %v37_v0  ;;  %v44_v6 = vld [vmem:[#allocation2 + $0x40] sm:$0xff]  ;;  %v914_v7 = vpack.c.bf16 %v47_v4, %v39_v2  ;;  %v38_v9 = vld [vmem:[#allocation2 + $0x10] sm:$0xff]  ;;  %v53_v11 = vld [vmem:[#allocation2 + $0x88] sm:$0xff]  ;;  %p1205_p9 = scmp.lt.s32.totalorder %s805_s20, %s805_s20 }
  0x16   :  { %v852_v8 = vpack.c.bf16 %v44_v6, %v36_v5  ;;  %v46_v10 = vld [vmem:[#allocation2 + $0x50] sm:$0xff]  ;;  %v61_v13 = vld [vmem:[#allocation2 + $0xc8] sm:$0xff]  ;;  %v55_v14 = vld [vmem:[#allocation2 + $0x98] sm:$0xff] }
  0x17   :  { %851 = vmatprep.subr.bf16.mxu0 %v850_v3  ;;  %v916_v12 = vpack.c.bf16 %v46_v10, %v38_v9  ;;  %v63_v15 = vld [vmem:[#allocation2 + $0xd8] sm:$0xff]  ;;  %915 = vmatprep.subr.bf16.mxu1 %v914_v7  ;;  %v854_v16 = vpack.c.bf16 %v61_v13, %v53_v11  ;;  %v52_v18 = vld [vmem:[#allocation2 + $0x80] sm:$0xff]  ;;  %v54_v20 = vld [vmem:[#allocation2 + $0x90] sm:$0xff] }
  0x18   :  { %853 = vmatpush1.bf16.msra.mxu0 %v852_v8  ;;  %v918_v17 = vpack.c.bf16 %v63_v15, %v55_v14  ;;  %v60_v19 = vld [vmem:[#allocation2 + $0xc0] sm:$0xff]  ;;  %v62_v22 = vld [vmem:[#allocation2 + $0xd0] sm:$0xff]  ;;  %v69_v23 = vld [vmem:[#allocation2 + $0x108] sm:$0xff] }
  0x19   :  { %917 = vmatpush1.bf16.msra.mxu1 %v916_v12  ;;  %v856_v21 = vpack.c.bf16 %v60_v19, %v52_v18  ;;  %v77_v24 = vld [vmem:[#allocation2 + $0x148] sm:$0xff]  ;;  %855 = vmatprep.subr.bf16.mxu0 %v854_v16  ;;  %v920_v25 = vpack.c.bf16 %v62_v22, %v54_v20  ;;  %v71_v27 = vld [vmem:[#allocation2 + $0x118] sm:$0xff]  ;;  %v68_v29 = vld [vmem:[#allocation2 + $0x100] sm:$0xff] }
  0x1a   :  { %919 = vmatprep.subr.bf16.mxu1 %v918_v17  ;;  %v858_v26 = vpack.c.bf16 %v77_v24, %v69_v23  ;;  %v79_v28 = vld [vmem:[#allocation2 + $0x158] sm:$0xff]  ;;  %v76_v31 = vld [vmem:[#allocation2 + $0x140] sm:$0xff]  ;;  %v70_v32 = vld [vmem:[#allocation2 + $0x110] sm:$0xff] }
  0x1b   :  { %v922_v30 = vpack.c.bf16 %v79_v28, %v71_v27  ;;  %v78_v33 = vld [vmem:[#allocation2 + $0x150] sm:$0xff]  ;;  %v860_v34 = vpack.c.bf16 %v76_v31, %v68_v29  ;;  %v85_v35 = vld [vmem:[#allocation2 + $0x188] sm:$0xff]  ;;  %v87_v37 = vld [vmem:[#allocation2 + $0x198] sm:$0xff] }
  0x1c   :  { %857 = vmatpush1.bf16.msra.mxu0 %v856_v21  ;;  %v93_v36 = vld [vmem:[#allocation2 + $0x1c8] sm:$0xff]  ;;  %v924_v38 = vpack.c.bf16 %v78_v33, %v70_v32  ;;  %v95_v40 = vld [vmem:[#allocation2 + $0x1d8] sm:$0xff]  ;;  %v84_v41 = vld [vmem:[#allocation2 + $0x180] sm:$0xff] }
  0x1d   :  { %921 = vmatpush1.bf16.msra.mxu1 %v920_v25  ;;  %859 = vmatprep.subr.bf16.mxu0 %v858_v26  ;;  %v862_v39 = vpack.c.bf16 %v93_v36, %v85_v35  ;;  %v92_v42 = vld [vmem:[#allocation2 + $0x1c0] sm:$0xff]  ;;  %v926_v43 = vpack.c.bf16 %v95_v40, %v87_v37  ;;  %v86_v44 = vld [vmem:[#allocation2 + $0x190] sm:$0xff]  ;;  %v101_v46 = vld [vmem:[#allocation2 + $0x208] sm:$0xff] }
  0x1e   :  { %923 = vmatprep.subr.bf16.mxu1 %v922_v30  ;;  %v94_v45 = vld [vmem:[#allocation2 + $0x1d0] sm:$0xff]  ;;  %v109_v47 = vld [vmem:[#allocation2 + $0x248] sm:$0xff]  ;;  %v103_v48 = vld [vmem:[#allocation2 + $0x218] sm:$0xff]  ;;  %v864_v50 = vpack.c.bf16 %v92_v42, %v84_v41 }
  0x1f   :  { %v111_v49 = vld [vmem:[#allocation2 + $0x258] sm:$0xff]  ;;  %v928_v51 = vpack.c.bf16 %v94_v45, %v86_v44  ;;  %v866_v52 = vpack.c.bf16 %v109_v47, %v101_v46  ;;  %v100_v53 = vld [vmem:[#allocation2 + $0x200] sm:$0xff]  ;;  %v102_v55 = vld [vmem:[#allocation2 + $0x210] sm:$0xff] }
  0x20   :  { %861 = vmatpush1.bf16.msra.mxu0 %v860_v34  ;;  %v108_v54 = vld [vmem:[#allocation2 + $0x240] sm:$0xff]  ;;  %v930_v56 = vpack.c.bf16 %v111_v49, %v103_v48  ;;  %v110_v57 = vld [vmem:[#allocation2 + $0x250] sm:$0xff]  ;;  %v117_v58 = vld [vmem:[#allocation2 + $0x288] sm:$0xff] }
  0x21   :  { %925 = vmatpush1.bf16.msra.mxu1 %v924_v38  ;;  %863 = vmatprep.subr.bf16.mxu0 %v862_v39  ;;  %v125_v59 = vld [vmem:[#allocation2 + $0x2c8] sm:$0xff]  ;;  %v119_v60 = vld [vmem:[#allocation2 + $0x298] sm:$0xff]  ;;  %v868_v62 = vpack.c.bf16 %v108_v54, %v100_v53  ;;  %v932_v63 = vpack.c.bf16 %v110_v57, %v102_v55  ;;  %v116_v1 = vld [vmem:[#allocation2 + $0x280] sm:$0xff] }
  0x22   :  { %927 = vmatprep.subr.bf16.mxu1 %v926_v43  ;;  %v127_v61 = vld [vmem:[#allocation2 + $0x2d8] sm:$0xff]  ;;  %v870_v0 = vpack.c.bf16 %v125_v59, %v117_v58  ;;  %v124_v2 = vld [vmem:[#allocation2 + $0x2c0] sm:$0xff]  ;;  %v118_v3 = vld [vmem:[#allocation2 + $0x290] sm:$0xff] }
  0x23   :  { %v934_v4 = vpack.c.bf16 %v127_v61, %v119_v60  ;;  %v126_v5 = vld [vmem:[#allocation2 + $0x2d0] sm:$0xff]  ;;  %v133_v6 = vld [vmem:[#allocation2 + $0x308] sm:$0xff]  ;;  %v135_v8 = vld [vmem:[#allocation2 + $0x318] sm:$0xff]  ;;  %v872_v10 = vpack.c.bf16 %v124_v2, %v116_v1 }
  0x24   :  { %865 = vmatpush1.bf16.msra.mxu0 %v864_v50  ;;  %v141_v7 = vld [vmem:[#allocation2 + $0x348] sm:$0xff]  ;;  %v143_v9 = vld [vmem:[#allocation2 + $0x358] sm:$0xff]  ;;  %v936_v11 = vpack.c.bf16 %v126_v5, %v118_v3  ;;  %v132_v13 = vld [vmem:[#allocation2 + $0x300] sm:$0xff] }
  0x25   :  { %929 = vmatpush1.bf16.msra.mxu1 %v928_v51  ;;  %867 = vmatprep.subr.bf16.mxu0 %v866_v52  ;;  %v874_v12 = vpack.c.bf16 %v141_v7, %v133_v6  ;;  %v140_v14 = vld [vmem:[#allocation2 + $0x340] sm:$0xff]  ;;  %v134_v15 = vld [vmem:[#allocation2 + $0x310] sm:$0xff]  ;;  %v938_v16 = vpack.c.bf16 %v143_v9, %v135_v8  ;;  %v149_v18 = vld [vmem:[#allocation2 + $0x388] sm:$0xff] }
  0x26   :  { %931 = vmatprep.subr.bf16.mxu1 %v930_v56  ;;  %v142_v17 = vld [vmem:[#allocation2 + $0x350] sm:$0xff]  ;;  %v157_v19 = vld [vmem:[#allocation2 + $0x3c8] sm:$0xff]  ;;  %v151_v20 = vld [vmem:[#allocation2 + $0x398] sm:$0xff]  ;;  %v876_v22 = vpack.c.bf16 %v140_v14, %v132_v13 }
  0x27   :  { %v159_v21 = vld [vmem:[#allocation2 + $0x3d8] sm:$0xff]  ;;  %v940_v23 = vpack.c.bf16 %v142_v17, %v134_v15  ;;  %v878_v24 = vpack.c.bf16 %v157_v19, %v149_v18  ;;  %v148_v25 = vld [vmem:[#allocation2 + $0x380] sm:$0xff]  ;;  %v150_v27 = vld [vmem:[#allocation2 + $0x390] sm:$0xff] }
  0x28   :  { %869 = vmatpush1.bf16.msra.mxu0 %v868_v62  ;;  %v156_v26 = vld [vmem:[#allocation2 + $0x3c0] sm:$0xff]  ;;  %v942_v28 = vpack.c.bf16 %v159_v21, %v151_v20  ;;  %v158_v29 = vld [vmem:[#allocation2 + $0x3d0] sm:$0xff]  ;;  %v165_v30 = vld [vmem:[#allocation2 + $0x408] sm:$0xff] }
  0x29   :  { %933 = vmatpush1.bf16.msra.mxu1 %v932_v63  ;;  %871 = vmatprep.subr.bf16.mxu0 %v870_v0  ;;  %v173_v31 = vld [vmem:[#allocation2 + $0x448] sm:$0xff]  ;;  %v167_v32 = vld [vmem:[#allocation2 + $0x418] sm:$0xff]  ;;  %v880_v34 = vpack.c.bf16 %v156_v26, %v148_v25  ;;  %v944_v35 = vpack.c.bf16 %v158_v29, %v150_v27  ;;  %v164_v37 = vld [vmem:[#allocation2 + $0x400] sm:$0xff] }
  0x2a   :  { %935 = vmatprep.subr.bf16.mxu1 %v934_v4  ;;  %v175_v33 = vld [vmem:[#allocation2 + $0x458] sm:$0xff]  ;;  %v882_v36 = vpack.c.bf16 %v173_v31, %v165_v30  ;;  %v172_v38 = vld [vmem:[#allocation2 + $0x440] sm:$0xff]  ;;  %v166_v39 = vld [vmem:[#allocation2 + $0x410] sm:$0xff] }
  0x2b   :  { %v946_v40 = vpack.c.bf16 %v175_v33, %v167_v32  ;;  %v174_v41 = vld [vmem:[#allocation2 + $0x450] sm:$0xff]  ;;  %v181_v42 = vld [vmem:[#allocation2 + $0x488] sm:$0xff]  ;;  %v183_v44 = vld [vmem:[#allocation2 + $0x498] sm:$0xff]  ;;  %v884_v46 = vpack.c.bf16 %v172_v38, %v164_v37 }
  0x2c   :  { %873 = vmatpush1.bf16.msra.mxu0 %v872_v10  ;;  %v189_v43 = vld [vmem:[#allocation2 + $0x4c8] sm:$0xff]  ;;  %v191_v45 = vld [vmem:[#allocation2 + $0x4d8] sm:$0xff]  ;;  %v948_v47 = vpack.c.bf16 %v174_v41, %v166_v39  ;;  %v180_v49 = vld [vmem:[#allocation2 + $0x480] sm:$0xff] }
  0x2d   :  { %937 = vmatpush1.bf16.msra.mxu1 %v936_v11  ;;  %875 = vmatprep.subr.bf16.mxu0 %v874_v12  ;;  %v886_v48 = vpack.c.bf16 %v189_v43, %v181_v42  ;;  %v188_v50 = vld [vmem:[#allocation2 + $0x4c0] sm:$0xff]  ;;  %v182_v51 = vld [vmem:[#allocation2 + $0x490] sm:$0xff]  ;;  %v950_v52 = vpack.c.bf16 %v191_v45, %v183_v44  ;;  %v197_v54 = vld [vmem:[#allocation2 + $0x508] sm:$0xff] }
  0x2e   :  { %939 = vmatprep.subr.bf16.mxu1 %v938_v16  ;;  %v190_v53 = vld [vmem:[#allocation2 + $0x4d0] sm:$0xff]  ;;  %v205_v55 = vld [vmem:[#allocation2 + $0x548] sm:$0xff]  ;;  %v199_v56 = vld [vmem:[#allocation2 + $0x518] sm:$0xff]  ;;  %v888_v58 = vpack.c.bf16 %v188_v50, %v180_v49 }
  0x2f   :  { %v207_v57 = vld [vmem:[#allocation2 + $0x558] sm:$0xff]  ;;  %v952_v59 = vpack.c.bf16 %v190_v53, %v182_v51  ;;  %v890_v60 = vpack.c.bf16 %v205_v55, %v197_v54  ;;  %v196_v61 = vld [vmem:[#allocation2 + $0x500] sm:$0xff]  ;;  %v198_v63 = vld [vmem:[#allocation2 + $0x510] sm:$0xff] }
  0x30   :  { %877 = vmatpush1.bf16.msra.mxu0 %v876_v22  ;;  %v204_v62 = vld [vmem:[#allocation2 + $0x540] sm:$0xff]  ;;  %v954_v0 = vpack.c.bf16 %v207_v57, %v199_v56  ;;  %v206_v1 = vld [vmem:[#allocation2 + $0x550] sm:$0xff]  ;;  %v213_v2 = vld [vmem:[#allocation2 + $0x588] sm:$0xff] }
  0x31   :  { %941 = vmatpush1.bf16.msra.mxu1 %v940_v23  ;;  %879 = vmatprep.subr.bf16.mxu0 %v878_v24  ;;  %v221_v3 = vld [vmem:[#allocation2 + $0x5c8] sm:$0xff]  ;;  %v215_v4 = vld [vmem:[#allocation2 + $0x598] sm:$0xff]  ;;  %v892_v6 = vpack.c.bf16 %v204_v62, %v196_v61  ;;  %v212_v7 = vld [vmem:[#allocation2 + $0x580] sm:$0xff]  ;;  %v956_v8 = vpack.c.bf16 %v206_v1, %v198_v63 }
  0x32   :  { %943 = vmatprep.subr.bf16.mxu1 %v942_v28  ;;  %v223_v5 = vld [vmem:[#allocation2 + $0x5d8] sm:$0xff]  ;;  %v894_v9 = vpack.c.bf16 %v221_v3, %v213_v2  ;;  %v220_v10 = vld [vmem:[#allocation2 + $0x5c0] sm:$0xff]  ;;  %v214_v11 = vld [vmem:[#allocation2 + $0x590] sm:$0xff] }
  0x33   :  { %v222_v12 = vld [vmem:[#allocation2 + $0x5d0] sm:$0xff]  ;;  %v958_v13 = vpack.c.bf16 %v223_v5, %v215_v4  ;;  %v229_v14 = vld [vmem:[#allocation2 + $0x608] sm:$0xff]  ;;  %v1275_v16 = vld.sshfl [vmem:[%s1406_s0] sm:$0x33 pattern:$0x76325410]  ;;  %v896_v20 = vpack.c.bf16 %v220_v10, %v212_v7 }
  0x34   :  { %881 = vmatpush1.bf16.msra.mxu0 %v880_v34  ;;  %v237_v15 = vld [vmem:[#allocation2 + $0x648] sm:$0xff]  ;;  %v231_v17 = vld [vmem:[#allocation2 + $0x618] sm:$0xff]  ;;  %v1279_v19 = vcombine.high %v1275_v16, %v1275_v16  ;;  %v960_v21 = vpack.c.bf16 %v222_v12, %v214_v11  ;;  %v228_v23 = vld [vmem:[#allocation2 + $0x600] sm:$0xff] }
  0x35   :  { %945 = vmatpush1.bf16.msra.mxu1 %v944_v35  ;;  %883 = vmatprep.subr.bf16.mxu0 %v882_v36  ;;  %v239_v18 = vld [vmem:[#allocation2 + $0x658] sm:$0xff]  ;;  %v898_v22 = vpack.c.bf16 %v237_v15, %v229_v14  ;;  %v236_v24 = vld [vmem:[#allocation2 + $0x640] sm:$0xff]  ;;  %v230_v25 = vld [vmem:[#allocation2 + $0x610] sm:$0xff] }
  0x36   :  { %947 = vmatprep.subr.bf16.mxu1 %v946_v40  ;;  %v962_v26 = vpack.c.bf16 %v239_v18, %v231_v17  ;;  %v238_v27 = vld [vmem:[#allocation2 + $0x650] sm:$0xff]  ;;  %v245_v28 = vld [vmem:[#allocation2 + $0x688] sm:$0xff]  ;;  %409 = vmatprep.mubr.f32.mxu0 %v1279_v19  ;;  %v247_v30 = vld [vmem:[#allocation2 + $0x698] sm:$0xff]  ;;  %v900_v32 = vpack.c.bf16 %v236_v24, %v228_v23 }
  0x37   :  { %v253_v29 = vld [vmem:[#allocation2 + $0x6c8] sm:$0xff]  ;;  %v255_v31 = vld [vmem:[#allocation2 + $0x6d8] sm:$0xff]  ;;  %480 = vmatprep.mubr.f32.mxu1 %v1279_v19  ;;  %v964_v33 = vpack.c.bf16 %v238_v27, %v230_v25  ;;  %v244_v35 = vld [vmem:[#allocation2 + $0x680] sm:$0xff] }
  0x38   :  { %885 = vmatpush1.bf16.msra.mxu0 %v884_v46  ;;  %v902_v34 = vpack.c.bf16 %v253_v29, %v245_v28  ;;  %v252_v36 = vld [vmem:[#allocation2 + $0x6c0] sm:$0xff]  ;;  %v246_v37 = vld [vmem:[#allocation2 + $0x690] sm:$0xff]  ;;  %v966_v38 = vpack.c.bf16 %v255_v31, %v247_v30  ;;  %v261_v40 = vld [vmem:[#allocation2 + $0x708] sm:$0xff] }
  0x39   :  { %949 = vmatpush1.bf16.msra.mxu1 %v948_v47  ;;  %887 = vmatprep.subr.bf16.mxu0 %v886_v48  ;;  %v254_v39 = vld [vmem:[#allocation2 + $0x6d0] sm:$0xff]  ;;  %v269_v41 = vld [vmem:[#allocation2 + $0x748] sm:$0xff]  ;;  %v263_v42 = vld [vmem:[#allocation2 + $0x718] sm:$0xff]  ;;  %v904_v44 = vpack.c.bf16 %v252_v36, %v244_v35 }
  0x3a   :  { %951 = vmatprep.subr.bf16.mxu1 %v950_v52  ;;  %v271_v43 = vld [vmem:[#allocation2 + $0x758] sm:$0xff]  ;;  %v968_v45 = vpack.c.bf16 %v254_v39, %v246_v37  ;;  %v906_v46 = vpack.c.bf16 %v269_v41, %v261_v40  ;;  %v260_v47 = vld [vmem:[#allocation2 + $0x700] sm:$0xff]  ;;  %v262_v49 = vld [vmem:[#allocation2 + $0x710] sm:$0xff] }
  0x3b   :  { %v268_v48 = vld [vmem:[#allocation2 + $0x740] sm:$0xff]  ;;  %v970_v50 = vpack.c.bf16 %v271_v43, %v263_v42  ;;  %v270_v51 = vld [vmem:[#allocation2 + $0x750] sm:$0xff]  ;;  %v277_v52 = vld [vmem:[#allocation2 + $0x788] sm:$0xff] }
  0x3c   :  { %889 = vmatpush1.bf16.msra.mxu0 %v888_v58  ;;  %v285_v53 = vld [vmem:[#allocation2 + $0x7c8] sm:$0xff]  ;;  %v279_v54 = vld [vmem:[#allocation2 + $0x798] sm:$0xff]  ;;  %v908_v56 = vpack.c.bf16 %v268_v48, %v260_v47  ;;  %v972_v57 = vpack.c.bf16 %v270_v51, %v262_v49  ;;  %v278_v61 = vld [vmem:[#allocation2 + $0x790] sm:$0xff] }
  0x3d   :  { %953 = vmatpush1.bf16.msra.mxu1 %v952_v59  ;;  %891 = vmatprep.subr.bf16.mxu0 %v890_v60  ;;  %v287_v55 = vld [vmem:[#allocation2 + $0x7d8] sm:$0xff]  ;;  %v910_v58 = vpack.c.bf16 %v285_v53, %v277_v52  ;;  %v276_v59 = vld [vmem:[#allocation2 + $0x780] sm:$0xff]  ;;  %v286_v63 = vld [vmem:[#allocation2 + $0x7d0] sm:$0xff] }
  0x3e   :  { %955 = vmatprep.subr.bf16.mxu1 %v954_v0  ;;  %v284_v60 = vld [vmem:[#allocation2 + $0x7c0] sm:$0xff]  ;;  %v974_v62 = vpack.c.bf16 %v287_v55, %v279_v54  ;;  %v41_v0 = vld [vmem:[#allocation2 + $0x28] sm:$0xff]  ;;  %v43_v2 = vld [vmem:[#allocation2 + $0x38] sm:$0xff]  ;;  %v976_v5 = vpack.c.bf16 %v286_v63, %v278_v61 }
  0x3f   :  { %v49_v1 = vld [vmem:[#allocation2 + $0x68] sm:$0xff]  ;;  %v51_v3 = vld [vmem:[#allocation2 + $0x78] sm:$0xff]  ;;  %v912_v4 = vpack.c.bf16 %v284_v60, %v276_v59  ;;  %v40_v7 = vld [vmem:[#allocation2 + $0x20] sm:$0xff] }
  0x40   :  { %893 = vmatpush1.bf16.msra.mxu0 %v892_v6  ;;  %v978_v6 = vpack.c.bf16 %v49_v1, %v41_v0  ;;  %v1042_v10 = vpack.c.bf16 %v51_v3, %v43_v2  ;;  %v50_v11 = vld [vmem:[#allocation2 + $0x70] sm:$0xff]  ;;  %v57_v12 = vld [vmem:[#allocation2 + $0xa8] sm:$0xff]  ;;  %v59_v14 = vld [vmem:[#allocation2 + $0xb8] sm:$0xff] }
  0x41   :  { %957 = vmatpush1.bf16.msra.mxu1 %v956_v8  ;;  %895 = vmatprep.subr.bf16.mxu0 %v894_v9  ;;  %v48_v8 = vld [vmem:[#allocation2 + $0x60] sm:$0xff]  ;;  %v42_v9 = vld [vmem:[#allocation2 + $0x30] sm:$0xff]  ;;  %v67_v15 = vld [vmem:[#allocation2 + $0xf8] sm:$0xff] }
  0x42   :  { %959 = vmatprep.subr.bf16.mxu1 %v958_v13  ;;  %v65_v13 = vld [vmem:[#allocation2 + $0xe8] sm:$0xff]  ;;  %v980_v17 = vpack.c.bf16 %v48_v8, %v40_v7  ;;  %v1044_v18 = vpack.c.bf16 %v50_v11, %v42_v9  ;;  %v58_v23 = vld [vmem:[#allocation2 + $0xb0] sm:$0xff]  ;;  %v1046_v24 = vpack.c.bf16 %v67_v15, %v59_v14  ;;  %v75_v28 = vld [vmem:[#allocation2 + $0x138] sm:$0xff] }
  0x43   :  { %v66_v25 = vld [vmem:[#allocation2 + $0xf0] sm:$0xff]  ;;  %v81_v27 = vld [vmem:[#allocation2 + $0x168] sm:$0xff]  ;;  %v83_v29 = vld [vmem:[#allocation2 + $0x178] sm:$0xff] }
  0x44   :  { %897 = vmatpush1.bf16.msra.mxu0 %v896_v20  ;;  %v982_v20 = vpack.c.bf16 %v65_v13, %v57_v12  ;;  %v1048_v31 = vpack.c.bf16 %v66_v25, %v58_v23  ;;  %v74_v35 = vld [vmem:[#allocation2 + $0x130] sm:$0xff]  ;;  %v1050_v36 = vpack.c.bf16 %v83_v29, %v75_v28  ;;  %v97_v39 = vld [vmem:[#allocation2 + $0x1e8] sm:$0xff]  ;;  %v91_v40 = vld [vmem:[#allocation2 + $0x1b8] sm:$0xff] }
  0x45   :  { %961 = vmatpush1.bf16.msra.mxu1 %v960_v21  ;;  %899 = vmatprep.subr.bf16.mxu0 %v898_v22  ;;  %v56_v21 = vld [vmem:[#allocation2 + $0xa0] sm:$0xff]  ;;  %v82_v37 = vld [vmem:[#allocation2 + $0x170] sm:$0xff]  ;;  %v99_v41 = vld [vmem:[#allocation2 + $0x1f8] sm:$0xff] }
  0x46   :  { %963 = vmatprep.subr.bf16.mxu1 %v962_v26  ;;  %v64_v22 = vld [vmem:[#allocation2 + $0xe0] sm:$0xff]  ;;  %v73_v26 = vld [vmem:[#allocation2 + $0x128] sm:$0xff]  ;;  %v1052_v43 = vpack.c.bf16 %v82_v37, %v74_v35  ;;  %v90_v47 = vld [vmem:[#allocation2 + $0x1b0] sm:$0xff]  ;;  %v1054_v48 = vpack.c.bf16 %v99_v41, %v91_v40 }
  0x47   :  { %v984_v30 = vpack.c.bf16 %v64_v22, %v56_v21  ;;  %v98_v49 = vld [vmem:[#allocation2 + $0x1f0] sm:$0xff]  ;;  %v113_v51 = vld [vmem:[#allocation2 + $0x268] sm:$0xff]  ;;  %v107_v52 = vld [vmem:[#allocation2 + $0x238] sm:$0xff] }
  0x48   :  { %901 = vmatpush1.bf16.msra.mxu0 %v900_v32  ;;  %v986_v32 = vpack.c.bf16 %v81_v27, %v73_v26  ;;  %v115_v53 = vld [vmem:[#allocation2 + $0x278] sm:$0xff]  ;;  %v114_v60 = vld [vmem:[#allocation2 + $0x270] sm:$0xff]  ;;  %v121_v61 = vld [vmem:[#allocation2 + $0x2a8] sm:$0xff] }
  0x49   :  { %965 = vmatpush1.bf16.msra.mxu1 %v964_v33  ;;  %903 = vmatprep.subr.bf16.mxu0 %v902_v34  ;;  %v72_v33 = vld [vmem:[#allocation2 + $0x120] sm:$0xff]  ;;  %v1058_v59 = vpack.c.bf16 %v115_v53, %v107_v52  ;;  %v123_v63 = vld [vmem:[#allocation2 + $0x2b8] sm:$0xff]  ;;  %v130_v8 = vld [vmem:[#allocation2 + $0x2f0] sm:$0xff] }
  0x4a   :  { %967 = vmatprep.subr.bf16.mxu1 %v966_v38  ;;  %v80_v34 = vld [vmem:[#allocation2 + $0x160] sm:$0xff]  ;;  %v89_v38 = vld [vmem:[#allocation2 + $0x1a8] sm:$0xff]  ;;  %v131_v0 = vld [vmem:[#allocation2 + $0x2f8] sm:$0xff] }
  0x4b   :  { %v988_v42 = vpack.c.bf16 %v80_v34, %v72_v33  ;;  %v1062_v7 = vpack.c.bf16 %v131_v0, %v123_v63  ;;  %v137_v9 = vld [vmem:[#allocation2 + $0x328] sm:$0xff]  ;;  %v139_v11 = vld [vmem:[#allocation2 + $0x338] sm:$0xff]  ;;  %v146_v22 = vld [vmem:[#allocation2 + $0x370] sm:$0xff] }
  0x4c   :  { %905 = vmatpush1.bf16.msra.mxu0 %v904_v44  ;;  %v990_v44 = vpack.c.bf16 %v97_v39, %v89_v38  ;;  %v147_v12 = vld [vmem:[#allocation2 + $0x378] sm:$0xff]  ;;  %v153_v23 = vld [vmem:[#allocation2 + $0x3a8] sm:$0xff]  ;;  %v162_v34 = vld [vmem:[#allocation2 + $0x3f0] sm:$0xff] }
  0x4d   :  { %969 = vmatpush1.bf16.msra.mxu1 %v968_v45  ;;  %907 = vmatprep.subr.bf16.mxu0 %v906_v46  ;;  %v88_v45 = vld [vmem:[#allocation2 + $0x1a0] sm:$0xff]  ;;  %v1066_v21 = vpack.c.bf16 %v147_v12, %v139_v11  ;;  %v155_v25 = vld [vmem:[#allocation2 + $0x3b8] sm:$0xff]  ;;  %v169_v35 = vld [vmem:[#allocation2 + $0x428] sm:$0xff] }
  0x4e   :  { %971 = vmatprep.subr.bf16.mxu1 %v970_v50  ;;  %v96_v46 = vld [vmem:[#allocation2 + $0x1e0] sm:$0xff]  ;;  %v105_v50 = vld [vmem:[#allocation2 + $0x228] sm:$0xff]  ;;  %v163_v26 = vld [vmem:[#allocation2 + $0x3f8] sm:$0xff] }
  0x4f   :  { %v992_v54 = vpack.c.bf16 %v96_v46, %v88_v45  ;;  %v994_v55 = vpack.c.bf16 %v113_v51, %v105_v50  ;;  %v1070_v33 = vpack.c.bf16 %v163_v26, %v155_v25  ;;  %v171_v37 = vld [vmem:[#allocation2 + $0x438] sm:$0xff]  ;;  %v178_v46 = vld [vmem:[#allocation2 + $0x470] sm:$0xff] }
  0x50   :  { %909 = vmatpush1.bf16.msra.mxu0 %v908_v56  ;;  %v104_v56 = vld [vmem:[#allocation2 + $0x220] sm:$0xff]  ;;  %v179_v38 = vld [vmem:[#allocation2 + $0x478] sm:$0xff] }
  0x51   :  { %973 = vmatpush1.bf16.msra.mxu1 %v972_v57  ;;  %911 = vmatprep.subr.bf16.mxu0 %v910_v58  ;;  %v112_v57 = vld [vmem:[#allocation2 + $0x260] sm:$0xff]  ;;  %v106_v58 = vld [vmem:[#allocation2 + $0x230] sm:$0xff]  ;;  %v1074_v45 = vpack.c.bf16 %v179_v38, %v171_v37  ;;  %v195_v50 = vld [vmem:[#allocation2 + $0x4f8] sm:$0xff] }
  0x52   :  { %975 = vmatprep.subr.bf16.mxu1 %v974_v62  ;;  %v129_v62 = vld [vmem:[#allocation2 + $0x2e8] sm:$0xff]  ;;  %v996_v1 = vpack.c.bf16 %v112_v57, %v104_v56  ;;  %v1060_v2 = vpack.c.bf16 %v114_v60, %v106_v58  ;;  %v194_v57 = vld [vmem:[#allocation2 + $0x4f0] sm:$0xff]  ;;  %v203_v60 = vld [vmem:[#allocation2 + $0x538] sm:$0xff] }
  0x53   :  { %v998_v3 = vpack.c.bf16 %v129_v62, %v121_v61  ;;  %v201_v58 = vld [vmem:[#allocation2 + $0x528] sm:$0xff]  ;;  %v211_v61 = vld [vmem:[#allocation2 + $0x578] sm:$0xff] }
  0x54   :  { %913 = vmatpush1.bf16.msra.mxu0 %v912_v4  ;;  %v120_v4 = vld [vmem:[#allocation2 + $0x2a0] sm:$0xff] }
  0x55   :  { %977 = vmatpush1.bf16.msra.mxu1 %v976_v5  ;;  %979 = vmatprep.subr.bf16.mxu0 %v978_v6  ;;  %v128_v5 = vld [vmem:[#allocation2 + $0x2e0] sm:$0xff]  ;;  %v122_v6 = vld [vmem:[#allocation2 + $0x2b0] sm:$0xff] }
  0x56   :  { %1043 = vmatprep.subr.bf16.mxu1 %v1042_v10  ;;  %v145_v10 = vld [vmem:[#allocation2 + $0x368] sm:$0xff]  ;;  %v1000_v13 = vpack.c.bf16 %v128_v5, %v120_v4  ;;  %v1064_v14 = vpack.c.bf16 %v130_v8, %v122_v6  ;;  %v1082_v4 = vpack.c.bf16 %v211_v61, %v203_v60  ;;  %v210_v5 = vld [vmem:[#allocation2 + $0x570] sm:$0xff]  ;;  %v219_v8 = vld [vmem:[#allocation2 + $0x5b8] sm:$0xff] }
  0x57   :  { %410 = vmatmul.mubr.f32.vlgmr.msra.gmra.mrb[0].mxu0 %v1275_v16  ;;  %v1002_v15 = vpack.c.bf16 %v145_v10, %v137_v9  ;;  %v217_v6 = vld [vmem:[#allocation2 + $0x5a8] sm:$0xff]  ;;  %v227_v9 = vld [vmem:[#allocation2 + $0x5f8] sm:$0xff] }
  0x58   :  { %481 = vmatmul.mubr.f32.vlgmr.msra.gmra.mrb[0].mxu1 %v1275_v16  ;;  %981 = vmatpush1.bf16.msra.mxu0 %v980_v17  ;;  %v136_v17 = vld [vmem:[#allocation2 + $0x320] sm:$0xff] }
  0x59   :  { %1045 = vmatpush1.bf16.msra.mxu1 %v1044_v18  ;;  %983 = vmatprep.subr.bf16.mxu0 %v982_v20  ;;  %v144_v18 = vld [vmem:[#allocation2 + $0x360] sm:$0xff]  ;;  %v138_v20 = vld [vmem:[#allocation2 + $0x330] sm:$0xff] }
  0x5a   :  { %1047 = vmatprep.subr.bf16.mxu1 %v1046_v24  ;;  %551 = vmatprep.mubr.f32.mxu0 %v1279_v19  ;;  %v161_v24 = vld [vmem:[#allocation2 + $0x3e8] sm:$0xff]  ;;  %v1004_v27 = vpack.c.bf16 %v144_v18, %v136_v17  ;;  %v1068_v28 = vpack.c.bf16 %v146_v22, %v138_v20  ;;  %v1086_v17 = vpack.c.bf16 %v227_v9, %v219_v8  ;;  %v226_v18 = vld [vmem:[#allocation2 + $0x5f0] sm:$0xff]  ;;  %v235_v22 = vld [vmem:[#allocation2 + $0x638] sm:$0xff] }
  0x5b   :  { %622 = vmatprep.mubr.f32.mxu1 %v1279_v19  ;;  %v1056_v19 = vpack.c.bf16 %v98_v49, %v90_v47  ;;  %v1006_v29 = vpack.c.bf16 %v161_v24, %v153_v23  ;;  %v185_v47 = vld [vmem:[#allocation2 + $0x4a8] sm:$0xff]  ;;  %v187_v49 = vld [vmem:[#allocation2 + $0x4b8] sm:$0xff]  ;;  %v675_v8 = vld [vmem:[%s1409_s3] sm:$0xff] }
  0x5c   :  { %985 = vmatpush1.bf16.msra.mxu0 %v984_v30  ;;  %v152_v30 = vld [vmem:[#allocation2 + $0x3a0] sm:$0xff]  ;;  %v1078_v56 = vpack.c.bf16 %v195_v50, %v187_v49  ;;  %v233_v20 = vld [vmem:[#allocation2 + $0x628] sm:$0xff]  ;;  %v243_v23 = vld [vmem:[#allocation2 + $0x678] sm:$0xff] }
  0x5d   :  { %1049 = vmatpush1.bf16.msra.mxu1 %v1048_v31  ;;  %987 = vmatprep.subr.bf16.mxu0 %v986_v32  ;;  %v160_v31 = vld [vmem:[#allocation2 + $0x3e0] sm:$0xff]  ;;  %v154_v32 = vld [vmem:[#allocation2 + $0x3b0] sm:$0xff]  ;;  %v676_v9 = vld [vmem:[%s1409_s3 + $0x8] sm:$0xff] }
  0x5e   :  { %1051 = vmatprep.subr.bf16.mxu1 %v1050_v36  ;;  %v177_v36 = vld [vmem:[#allocation2 + $0x468] sm:$0xff]  ;;  %v1008_v39 = vpack.c.bf16 %v160_v31, %v152_v30  ;;  %v1072_v40 = vpack.c.bf16 %v162_v34, %v154_v32  ;;  %v1090_v30 = vpack.c.bf16 %v243_v23, %v235_v22  ;;  %v242_v31 = vld [vmem:[#allocation2 + $0x670] sm:$0xff]  ;;  %v251_v34 = vld [vmem:[#allocation2 + $0x6b8] sm:$0xff] }
  0x5f   :  { %v1010_v41 = vpack.c.bf16 %v177_v36, %v169_v35  ;;  %v249_v32 = vld [vmem:[#allocation2 + $0x6a8] sm:$0xff]  ;;  %v259_v35 = vld [vmem:[#allocation2 + $0x6f8] sm:$0xff] }
  0x60   :  { %989 = vmatpush1.bf16.msra.mxu0 %v988_v42  ;;  %v168_v42 = vld [vmem:[#allocation2 + $0x420] sm:$0xff]  ;;  %v680_v22 = vld [vmem:[%s1409_s3 + $0x28] sm:$0xff] }
  0x61   :  { %1053 = vmatpush1.bf16.msra.mxu1 %v1052_v43  ;;  %991 = vmatprep.subr.bf16.mxu0 %v990_v44  ;;  %v176_v43 = vld [vmem:[#allocation2 + $0x460] sm:$0xff]  ;;  %v170_v44 = vld [vmem:[#allocation2 + $0x430] sm:$0xff] }
  0x62   :  { %1055 = vmatprep.subr.bf16.mxu1 %v1054_v48  ;;  %v193_v48 = vld [vmem:[#allocation2 + $0x4e8] sm:$0xff]  ;;  %v1012_v51 = vpack.c.bf16 %v176_v43, %v168_v42  ;;  %v1076_v52 = vpack.c.bf16 %v178_v46, %v170_v44  ;;  %v1094_v42 = vpack.c.bf16 %v259_v35, %v251_v34  ;;  %v258_v43 = vld [vmem:[#allocation2 + $0x6f0] sm:$0xff]  ;;  %v267_v46 = vld [vmem:[#allocation2 + $0x738] sm:$0xff] }
  0x63   :  { %v1014_v53 = vpack.c.bf16 %v193_v48, %v185_v47  ;;  %v265_v44 = vld [vmem:[#allocation2 + $0x728] sm:$0xff]  ;;  %v275_v47 = vld [vmem:[#allocation2 + $0x778] sm:$0xff] }
  0x64   :  { %993 = vmatpush1.bf16.msra.mxu0 %v992_v54  ;;  %v184_v54 = vld [vmem:[#allocation2 + $0x4a0] sm:$0xff]  ;;  %v684_v34 = vld [vmem:[%s1409_s3 + $0x48] sm:$0xff] }
  0x65   :  { %1057 = vmatpush1.bf16.msra.mxu1 %v1056_v19  ;;  %995 = vmatprep.subr.bf16.mxu0 %v994_v55  ;;  %v192_v19 = vld [vmem:[#allocation2 + $0x4e0] sm:$0xff]  ;;  %v186_v55 = vld [vmem:[#allocation2 + $0x4b0] sm:$0xff] }
  0x66   :  { %1059 = vmatprep.subr.bf16.mxu1 %v1058_v59  ;;  %v209_v59 = vld [vmem:[#allocation2 + $0x568] sm:$0xff]  ;;  %v1016_v62 = vpack.c.bf16 %v192_v19, %v184_v54  ;;  %v1080_v63 = vpack.c.bf16 %v194_v57, %v186_v55  ;;  %v1098_v54 = vpack.c.bf16 %v275_v47, %v267_v46  ;;  %v274_v19 = vld [vmem:[#allocation2 + $0x770] sm:$0xff]  ;;  %v283_v57 = vld [vmem:[#allocation2 + $0x7b8] sm:$0xff] }
  0x67   :  { %v1018_v0 = vpack.c.bf16 %v209_v59, %v201_v58  ;;  %v281_v55 = vld [vmem:[#allocation2 + $0x7a8] sm:$0xff]  ;;  %v291_v58 = vld [vmem:[#allocation2 + $0x7f8] sm:$0xff]  ;;  %v705_v47 = vld [vmem:[%s1409_s3 + $0xf0] sm:$0xff] }
  0x68   :  { %997 = vmatpush1.bf16.msra.mxu0 %v996_v1  ;;  %v200_v1 = vld [vmem:[#allocation2 + $0x520] sm:$0xff]  ;;  %v688_v46 = vld [vmem:[%s1409_s3 + $0x68] sm:$0xff] }
  0x69   :  { %1061 = vmatpush1.bf16.msra.mxu1 %v1060_v2  ;;  %999 = vmatprep.subr.bf16.mxu0 %v998_v3  ;;  %v208_v2 = vld [vmem:[#allocation2 + $0x560] sm:$0xff]  ;;  %v202_v3 = vld [vmem:[#allocation2 + $0x530] sm:$0xff] }
  0x6a   :  { %1063 = vmatprep.subr.bf16.mxu1 %v1062_v7  ;;  %v225_v7 = vld [vmem:[#allocation2 + $0x5e8] sm:$0xff]  ;;  %v1020_v10 = vpack.c.bf16 %v208_v2, %v200_v1  ;;  %v1084_v11 = vpack.c.bf16 %v210_v5, %v202_v3  ;;  %v282_v1 = vld [vmem:[#allocation2 + $0x7b0] sm:$0xff]  ;;  %v691_v5 = vld [vmem:[%s1409_s3 + $0x80] sm:$0xff] }
  0x6b   :  { %v1022_v12 = vpack.c.bf16 %v225_v7, %v217_v6  ;;  %v290_v2 = vld [vmem:[#allocation2 + $0x7f0] sm:$0xff]  ;;  %v692_v6 = vld [vmem:[%s1409_s3 + $0x88] sm:$0xff] }
  0x6c   :  { %1001 = vmatpush1.bf16.msra.mxu0 %v1000_v13  ;;  %v216_v13 = vld [vmem:[#allocation2 + $0x5a0] sm:$0xff]  ;;  %v1106_v7 = vpack.c.bf16 %v692_v6, %v691_v5 }
  0x6d   :  { %1065 = vmatpush1.bf16.msra.mxu1 %v1064_v14  ;;  %1003 = vmatprep.subr.bf16.mxu0 %v1002_v15  ;;  %v224_v14 = vld [vmem:[#allocation2 + $0x5e0] sm:$0xff]  ;;  %v218_v15 = vld [vmem:[#allocation2 + $0x5b0] sm:$0xff] }
  0x6e   :  { %1067 = vmatprep.subr.bf16.mxu1 %v1066_v21  ;;  %v241_v21 = vld [vmem:[#allocation2 + $0x668] sm:$0xff]  ;;  %v1024_v24 = vpack.c.bf16 %v224_v14, %v216_v13  ;;  %v1088_v25 = vpack.c.bf16 %v226_v18, %v218_v15  ;;  %v677_v13 = vld [vmem:[%s1409_s3 + $0x10] sm:$0xff]  ;;  %v678_v14 = vld [vmem:[%s1409_s3 + $0x18] sm:$0xff] }
  0x6f   :  { %v1026_v26 = vpack.c.bf16 %v241_v21, %v233_v20  ;;  %v1112_v15 = vpack.c.bf16 %v678_v14, %v677_v13  ;;  %v696_v18 = vld [vmem:[%s1409_s3 + $0xa8] sm:$0xff]  ;;  %v679_v21 = vld [vmem:[%s1409_s3 + $0x20] sm:$0xff] }
  0x70   :  { %1005 = vmatpush1.bf16.msra.mxu0 %v1004_v27  ;;  %v232_v27 = vld [vmem:[#allocation2 + $0x620] sm:$0xff]  ;;  %v1116_v23 = vpack.c.bf16 %v680_v22, %v679_v21 }
  0x71   :  { %1069 = vmatpush1.bf16.msra.mxu1 %v1068_v28  ;;  %1007 = vmatprep.subr.bf16.mxu0 %v1006_v29  ;;  %v240_v28 = vld [vmem:[#allocation2 + $0x660] sm:$0xff]  ;;  %v234_v29 = vld [vmem:[#allocation2 + $0x630] sm:$0xff] }
  0x72   :  { %1071 = vmatprep.subr.bf16.mxu1 %v1070_v33  ;;  %v257_v33 = vld [vmem:[#allocation2 + $0x6e8] sm:$0xff]  ;;  %v1028_v36 = vpack.c.bf16 %v240_v28, %v232_v27  ;;  %v1092_v37 = vpack.c.bf16 %v242_v31, %v234_v29  ;;  %v681_v27 = vld [vmem:[%s1409_s3 + $0x30] sm:$0xff]  ;;  %v682_v28 = vld [vmem:[%s1409_s3 + $0x38] sm:$0xff] }
  0x73   :  { %v1030_v38 = vpack.c.bf16 %v257_v33, %v249_v32  ;;  %v1120_v29 = vpack.c.bf16 %v682_v28, %v681_v27  ;;  %v700_v31 = vld [vmem:[%s1409_s3 + $0xc8] sm:$0xff]  ;;  %v683_v33 = vld [vmem:[%s1409_s3 + $0x40] sm:$0xff] }
  0x74   :  { %1009 = vmatpush1.bf16.msra.mxu0 %v1008_v39  ;;  %v248_v39 = vld [vmem:[#allocation2 + $0x6a0] sm:$0xff]  ;;  %v1124_v35 = vpack.c.bf16 %v684_v34, %v683_v33 }
  0x75   :  { %1073 = vmatpush1.bf16.msra.mxu1 %v1072_v40  ;;  %1011 = vmatprep.subr.bf16.mxu0 %v1010_v41  ;;  %v256_v40 = vld [vmem:[#allocation2 + $0x6e0] sm:$0xff]  ;;  %v250_v41 = vld [vmem:[#allocation2 + $0x6b0] sm:$0xff] }
  0x76   :  { %1075 = vmatprep.subr.bf16.mxu1 %v1074_v45  ;;  %v273_v45 = vld [vmem:[#allocation2 + $0x768] sm:$0xff]  ;;  %v1032_v48 = vpack.c.bf16 %v256_v40, %v248_v39  ;;  %v1096_v49 = vpack.c.bf16 %v258_v43, %v250_v41  ;;  %v686_v40 = vld [vmem:[%s1409_s3 + $0x58] sm:$0xff]  ;;  %v703_v41 = vld [vmem:[%s1409_s3 + $0xe0] sm:$0xff] }
  0x77   :  { %v1034_v50 = vpack.c.bf16 %v273_v45, %v265_v44  ;;  %v687_v45 = vld [vmem:[%s1409_s3 + $0x60] sm:$0xff] }
  0x78   :  { %1013 = vmatpush1.bf16.msra.mxu0 %v1012_v51  ;;  %v264_v51 = vld [vmem:[#allocation2 + $0x720] sm:$0xff] }
  0x79   :  { %1077 = vmatpush1.bf16.msra.mxu1 %v1076_v52  ;;  %1015 = vmatprep.subr.bf16.mxu0 %v1014_v53  ;;  %v272_v52 = vld [vmem:[#allocation2 + $0x760] sm:$0xff]  ;;  %v266_v53 = vld [vmem:[#allocation2 + $0x730] sm:$0xff] }
  0x7a   :  { %1079 = vmatprep.subr.bf16.mxu1 %v1078_v56  ;;  %v289_v56 = vld [vmem:[#allocation2 + $0x7e8] sm:$0xff]  ;;  %v1036_v59 = vpack.c.bf16 %v272_v52, %v264_v51  ;;  %v1100_v60 = vpack.c.bf16 %v274_v19, %v266_v53  ;;  %v689_v51 = vld [vmem:[%s1409_s3 + $0x70] sm:$0xff]  ;;  %v690_v52 = vld [vmem:[%s1409_s3 + $0x78] sm:$0xff] }
  0x7b   :  { %v1038_v61 = vpack.c.bf16 %v289_v56, %v281_v55  ;;  %v1136_v53 = vpack.c.bf16 %v690_v52, %v689_v51  ;;  %v292_v56 = vld [vmem:[%s1408_s2] sm:$0xff] }
  0x7c   :  { %1017 = vmatpush1.bf16.msra.mxu0 %v1016_v62  ;;  %v280_v62 = vld [vmem:[#allocation2 + $0x7a0] sm:$0xff] }
  0x7d   :  { %1081 = vmatpush1.bf16.msra.mxu1 %v1080_v63  ;;  %1019 = vmatprep.subr.bf16.mxu0 %v1018_v0  ;;  %v288_v63 = vld [vmem:[#allocation2 + $0x7e0] sm:$0xff]  ;;  %v1102_v0 = vpack.c.bf16 %v291_v58, %v283_v57 }
  0x7e   :  { %1083 = vmatprep.subr.bf16.mxu1 %v1082_v4  ;;  %v1040_v3 = vpack.c.bf16 %v288_v63, %v280_v62  ;;  %v1104_v4 = vpack.c.bf16 %v290_v2, %v282_v1 }
  0x80   :  { %1021 = vmatpush1.bf16.msra.mxu0 %v1020_v10  ;;  %v1108_v10 = vpack.c.bf16 %v676_v9, %v675_v8 }
  0x81   :  { %1085 = vmatpush1.bf16.msra.mxu1 %v1084_v11  ;;  %1023 = vmatprep.subr.bf16.mxu0 %v1022_v12  ;;  %v694_v11 = vld [vmem:[%s1409_s3 + $0x98] sm:$0xff] }
  0x82   :  { %1087 = vmatprep.subr.bf16.mxu1 %v1086_v17  ;;  %v695_v17 = vld [vmem:[%s1409_s3 + $0xa0] sm:$0xff] }
  0x83   :  { %v1114_v20 = vpack.c.bf16 %v696_v18, %v695_v17 }
  0x84   :  { %1025 = vmatpush1.bf16.msra.mxu0 %v1024_v24  ;;  %v697_v24 = vld [vmem:[%s1409_s3 + $0xb0] sm:$0xff] }
  0x85   :  { %1089 = vmatpush1.bf16.msra.mxu1 %v1088_v25  ;;  %1027 = vmatprep.subr.bf16.mxu0 %v1026_v26  ;;  %v698_v25 = vld [vmem:[%s1409_s3 + $0xb8] sm:$0xff] }
  0x86   :  { %1091 = vmatprep.subr.bf16.mxu1 %v1090_v30  ;;  %v1118_v26 = vpack.c.bf16 %v698_v25, %v697_v24  ;;  %v699_v30 = vld [vmem:[%s1409_s3 + $0xc0] sm:$0xff] }
  0x87   :  { %v1122_v32 = vpack.c.bf16 %v700_v31, %v699_v30 }
  0x88   :  { %1029 = vmatpush1.bf16.msra.mxu0 %v1028_v36  ;;  %v701_v36 = vld [vmem:[%s1409_s3 + $0xd0] sm:$0xff] }
  0x89   :  { %1093 = vmatpush1.bf16.msra.mxu1 %v1092_v37  ;;  %1031 = vmatprep.subr.bf16.mxu0 %v1030_v38  ;;  %v702_v37 = vld [vmem:[%s1409_s3 + $0xd8] sm:$0xff]  ;;  %v685_v38 = vld [vmem:[%s1409_s3 + $0x50] sm:$0xff] }
  0x8a   :  { %1095 = vmatprep.subr.bf16.mxu1 %v1094_v42  ;;  %v1126_v39 = vpack.c.bf16 %v702_v37, %v701_v36  ;;  %v704_v42 = vld [vmem:[%s1409_s3 + $0xe8] sm:$0xff]  ;;  %v1128_v43 = vpack.c.bf16 %v686_v40, %v685_v38 }
  0x8b   :  { %v1130_v44 = vpack.c.bf16 %v704_v42, %v703_v41 }
  0x8c   :  { %1033 = vmatpush1.bf16.msra.mxu0 %v1032_v48  ;;  %v706_v48 = vld [vmem:[%s1409_s3 + $0xf8] sm:$0xff] }
  0x8d   :  { %1097 = vmatpush1.bf16.msra.mxu1 %v1096_v49  ;;  %1035 = vmatprep.subr.bf16.mxu0 %v1034_v50  ;;  %v1132_v49 = vpack.c.bf16 %v688_v46, %v687_v45  ;;  %v1134_v50 = vpack.c.bf16 %v706_v48, %v705_v47 }
  0x8e   :  { %1099 = vmatprep.subr.bf16.mxu1 %v1098_v54  ;;  %v294_v54 = vlaneseq }
  0x90   :  { %1037 = vmatpush1.bf16.msra.mxu0 %v1036_v59  ;;  %v295_v19 = vshrl.u32 %v294_v54, 7 }
  0x91   :  { %1101 = vmatpush1.bf16.msra.mxu1 %v1100_v60  ;;  %1039 = vmatprep.subr.bf16.mxu0 %v1038_v61 }
  0x92   :  { %1103 = vmatprep.subr.bf16.mxu1 %v1102_v0  ;;  %v296_v55 = vsub.s32 0, %v295_v19  ;;  %v304_v57 = vsub.s32 2, %v295_v19  ;;  %v300_v58 = vsub.s32 1, %v295_v19  ;;  %v308_v59 = vsub.s32 3, %v295_v19 }
  0x93   :  { %v312_v31 = vsub.s32 4, %v295_v19  ;;  %v316_v33 = vsub.s32 5, %v295_v19  ;;  %v324_v34 = vsub.s32 7, %v295_v19 }
  0x94   :  { %1041 = vmatpush1.bf16.msra.mxu0 %v1040_v3  ;;  %v297_v60 = vrot.slane %v292_v56, %v296_v55  ;;  %v305_v61 = vrot.slane %v292_v56, %v304_v57  ;;  %v301_v62 = vrot.slane %v292_v56, %v300_v58  ;;  %v309_v63 = vrot.slane %v292_v56, %v308_v59 }
  0x95   :  { %1105 = vmatpush1.bf16.msra.mxu1 %v1104_v4  ;;  %1107 = vmatprep.subr.bf16.mxu0 %v1106_v7  ;;  %v317_v37 = vrot.slane %v292_v56, %v316_v33  ;;  %v325_v38 = vrot.slane %v292_v56, %v324_v34 }
  0x97   :  { %552 = vmatmul.mubr.f32.vlgmr.msra.gmra.mrb[2].mxu0 %v1275_v16 }
  0x98   :  { %623 = vmatmul.mubr.f32.vlgmr.msra.gmra.mrb[2].mxu1 %v1275_v16  ;;  %1109 = vmatpush3.bf16.msra.mxu0 %v1108_v10  ;;  %v693_v16 = vld [vmem:[%s1409_s3 + $0x90] sm:$0xff] }
  0x99   :  { %v1110_v12 = vpack.c.bf16 %v694_v11, %v693_v16 }
  0x9b   :  { %1111 = vmatprep.subr.bf16.mxu0 %v1110_v12 }
  0x9c   :  { %1113 = vmatpush3.bf16.msra.mxu0 %v1112_v15 }
  0x9d   :  { %1115 = vmatprep.subr.bf16.mxu0 %v1114_v20 }
  0xa0   :  { %1117 = vmatpush3.bf16.msra.mxu0 %v1116_v23 }
  0xa1   :  { %1119 = vmatprep.subr.bf16.mxu0 %v1118_v26 }
  0xa4   :  { %1121 = vmatpush3.bf16.msra.mxu0 %v1120_v29 }
  0xa5   :  { %1123 = vmatprep.subr.bf16.mxu0 %v1122_v32  ;;  %v320_v32 = vsub.s32 6, %v295_v19 }
  0xa7   :  { %v321_v36 = vrot.slane %v292_v56, %v320_v32 }
  0xa8   :  { %1125 = vmatpush3.bf16.msra.mxu0 %v1124_v35  ;;  %v313_v35 = vrot.slane %v292_v56, %v312_v31 }
  0xa9   :  { %1127 = vmatprep.subr.bf16.mxu0 %v1126_v39 }
  0xac   :  { %1129 = vmatpush3.bf16.msra.mxu0 %v1128_v43 }
  0xad   :  { %1131 = vmatprep.subr.bf16.mxu0 %v1130_v44 }
  0xb0   :  { %1133 = vmatpush3.bf16.msra.mxu0 %v1132_v49 }
  0xb1   :  { %1135 = vmatprep.subr.bf16.mxu0 %v1134_v50 }
  0xb4   :  { %1137 = vmatpush3.bf16.msra.mxu0 %v1136_v53 }
 0x12a   :  { %v411_v0 = vpop.f32.mrb[0].mxu0 }
 0x12b   :  { %v412_v1 = vadd.f32 %v411_v0, %v297_v60  ;;  %v482_v2 = vpop.f32.mrb[0].mxu1  ;;  %v413_v3 = vpop.f32.mrb[1].mxu0 }
 0x12c   :  { %v483_v4 = vadd.f32 %v482_v2, %v305_v61  ;;  %v414_v5 = vadd.f32 %v413_v3, %v301_v62  ;;  %v484_v6 = vpop.f32.mrb[1].mxu1 }
 0x12d   :  { %v629_v7 = vsub.f32 0.0, %v412_v1  ;;  %v485_v8 = vadd.f32 %v484_v6, %v309_v63 }
 0x12e   :  { %v631_v9 = vsub.f32 0.0, %v483_v4  ;;  %v630_v10 = vsub.f32 0.0, %v414_v5 }
 0x12f   :  { %v637_v16 = vmul.f32 1.442695, %v629_v7  ;;  %v632_v11 = vsub.f32 0.0, %v485_v8  ;;  %v814_v8 = vld [vmem:[%s1410_s4] ss:$0 sm:$0xff]  ;;  %s1200_s4 = scalar_lea.vmem %s805_s20, 32 }
 0x130   :  { %v641_v12 = vmul.f32 1.442695, %v631_v9  ;;  %v639_v13 = vmul.f32 1.442695, %v630_v10  ;;  %p1201_p8 = scmp.ne.s32.totalorder %s805_s20, %s1200_s4  ;;  %p1206_p10 = scmp.lt.s32.totalorder %s1200_s4, %s1200_s4 }
 0x131   :  { %1142 = vpow2.f32 %v637_v16  ;;  %v643_v14 = vmul.f32 1.442695, %v632_v11 }
 0x132   :  { %1144 = vpow2.f32 %v641_v12  ;;  %p1207_p11 = por %p1206_p10, %p1205_p9 }
 0x133   :  { %1146 = vpow2.f32 %v639_v13 }
 0x134   :  { %1148 = vpow2.f32 %v643_v14  ;;  %p1208_p12 = pnand %p1207_p11, %p1201_p8 }
 0x13b   :  { %v1143_v15 = vpop.eup %1142 }
 0x13c   :  { %v1145_v17 = vpop.eup %1144  ;;  %v653_v18 = vadd.f32 1.0, %v1143_v15 }
 0x13d   :  { %v1147_v20 = vpop.eup %1146  ;;  %v655_v21 = vadd.f32 1.0, %v1145_v17 }
 0x13e   :  { %v1149_v22 = vpop.eup %1148  ;;  %1150 = vrcp.f32 %v653_v18  ;;  %v654_v23 = vadd.f32 1.0, %v1147_v20 }
 0x13f   :  { %1152 = vrcp.f32 %v655_v21  ;;  %v656_v24 = vadd.f32 1.0, %v1149_v22 }
 0x140   :  { %1154 = vrcp.f32 %v654_v23 }
 0x141   :  { %1156 = vrcp.f32 %v656_v24 }
 0x148   :  { %v1151_v25 = vpop.eup %1150 }
 0x149   :  { %v1153_v26 = vpop.eup %1152 }
 0x14a   :  { %v1155_v27 = vpop.eup %1154  ;;  %v669_v28 = vmax.f32 %v1151_v25, %v1153_v26 }
 0x14b   :  { %v1157_v29 = vpop.eup %1156 }
 0x14c   :  { %v670_v30 = vmax.f32 %v1155_v27, %v1157_v29 }
 0x16a   :  { %v553_v39 = vpop.f32.mrb[2].mxu0 }
 0x16b   :  { %v554_v40 = vadd.f32 %v553_v39, %v313_v35  ;;  %v624_v41 = vpop.f32.mrb[2].mxu1  ;;  %v555_v42 = vpop.f32.mrb[3].mxu0 }
 0x16c   :  { %v625_v43 = vadd.f32 %v624_v41, %v321_v36  ;;  %v556_v44 = vadd.f32 %v555_v42, %v317_v37  ;;  %v626_v45 = vpop.f32.mrb[3].mxu1 }
 0x16d   :  { %v633_v46 = vsub.f32 0.0, %v554_v40  ;;  %v627_v47 = vadd.f32 %v626_v45, %v325_v38 }
 0x16e   :  { %v635_v48 = vsub.f32 0.0, %v625_v43  ;;  %v634_v49 = vsub.f32 0.0, %v556_v44 }
 0x16f   :  { %v645_v50 = vmul.f32 1.442695, %v633_v46  ;;  %v636_v51 = vsub.f32 0.0, %v627_v47 }
 0x170   :  { %v649_v52 = vmul.f32 1.442695, %v635_v48  ;;  %v647_v53 = vmul.f32 1.442695, %v634_v49 }
 0x171   :  { %1158 = vpow2.f32 %v645_v50  ;;  %v651_v54 = vmul.f32 1.442695, %v636_v51 }
 0x172   :  { %1160 = vpow2.f32 %v649_v52 }
 0x173   :  { %1162 = vpow2.f32 %v647_v53 }
 0x174   :  { %1164 = vpow2.f32 %v651_v54 }
 0x17b   :  { %v1159_v19 = vpop.eup %1158 }
 0x17c   :  { %v1161_v55 = vpop.eup %1160  ;;  %v657_v56 = vadd.f32 1.0, %v1159_v19 }
 0x17d   :  { %v1163_v57 = vpop.eup %1162  ;;  %v659_v58 = vadd.f32 1.0, %v1161_v55 }
 0x17e   :  { %v1165_v59 = vpop.eup %1164  ;;  %1166 = vrcp.f32 %v657_v56  ;;  %v658_v60 = vadd.f32 1.0, %v1163_v57 }
 0x17f   :  { %1168 = vrcp.f32 %v659_v58  ;;  %v660_v61 = vadd.f32 1.0, %v1165_v59 }
 0x180   :  { %1170 = vrcp.f32 %v658_v60 }
 0x181   :  { %1172 = vrcp.f32 %v660_v61 }
 0x188   :  { %v1167_v62 = vpop.eup %1166 }
 0x189   :  { %v1169_v63 = vpop.eup %1168 }
 0x18a   :  { %v1171_v0 = vpop.eup %1170  ;;  %v671_v1 = vmax.f32 %v1167_v62, %v1169_v63 }
 0x18b   :  { %v1173_v2 = vpop.eup %1172 }
 0x18c   :  { %v672_v3 = vmax.f32 %v1171_v0, %v1173_v2  ;;  %v673_v4 = vmax.f32 %v669_v28, %v671_v1 }
 0x18e   :  { %v674_v5 = vmax.f32 %v670_v30, %v672_v3 }
 0x190   :  { %778 = vmatprep.mubr.f32.mxu0 %v674_v5 }
 0x191   :  { %779 = vmatmul.mubr.f32.vlgmr.msra.gmra.mrb[4].mxu0 %v673_v4 }
 0x264   :  { %v847_v6 = vpop.f32.mrb[4].mxu0 }
 0x265   :  { %v848_v7 = vpop.f32.mrb[5].mxu0 }
 0x266   :  { %v849_v9 = vadd.f32 %v848_v7, %v847_v6 }
 0x268   :  { %v781_v10 = vadd.f32 %v849_v9, %v814_v8 }
 0x26a   :  { %v785_v16 = vsel %vm784_vm0, %v781_v10, -inf }
 0x26b   :  { %786 = vmax.xlane.f32.xlu0 %v785_v16 }
 0x2f8   :  { %v787_v11 = vpop.xlane.xlu0 %786 }
 0x2f9   :  { %v788_v12 = vsub.f32 %v781_v10, %v787_v11 }
 0x2fb   :  { %v789_v13 = vmul.f32 1.442695, %v788_v12 }
 0x2fd   :  { %1174 = vpow2.f32 %v789_v13 }
 0x307   :  { %v1175_v14 = vpop.eup %1174 }
 0x308   :  { %v791_v15 = vsel %vm784_vm0, %v1175_v14, 0.0 }
 0x309   :  { %792 = vadd.xlane.f32.xlu0 %v791_v15 }
 0x396   :  { %v793_v17 = vpop.xlane.xlu0 %792 }
 0x397   :  { %1176 = vlog2.f32 %v793_v17 }
 0x3a1   :  { %v1177_v18 = vpop.eup %1176 }
 0x3a2   :  { %v795_v20 = vmul.f32 0.6931472, %v1177_v18 }
 0x3a4   :  { %v796_v21 = vsub.f32 %v788_v12, %v795_v20 }
 0x3a6   :  { %797 = vst.msk [vmem:[#allocation5] sm:$0x3] %vm784_vm0, %v796_v21 }
 0x3a7   :  { %1211 = shalt.err (!%p1208_p12)
}
 0x3a8   :  { %s1212_s23 = scalar_lea.hbm %s1411_s5, 32 }
 0x3a9   :  { %p1213_p13 = scmp.ne.s32.totalorder %s1411_s5, %s1212_s23  ;;  %p1216_p0 = scmp.lt.u32.totalorder %s1212_s23, %s1411_s5 }
 0x3ab   :  { %p1218_p1 = pnand %p1216_p0, %p1213_p13 }
 0x3ad   :  { %1221 = shalt.err (!%p1218_p1)
}
 0x3ae   :  { %807 = dma.vmem_to_hbm [thread:$0]  %s805_s20, 32, %s1411_s5, [#allocation4]  }
 0x3af   :  { %1224 = dma.done.wait [#allocation4], 32  }
 0x3b0   :  { %1225 = vsyncadd [#allocation4], 4294967264 }
 0x3b1   :  { %811 = vsyncpa [#allocation3], 1 }
 0x3b2   :  { %812 = vsyncpa [#allocation4], 1 }

</bundles_post_ra>
